<compile_context>
chip_gen: v7x
topology: tpu7x:2x2x1
jax: 0.10.0
libtpu: 0.0.40
codegen_flags: <defaults>
</compile_context>

<pallas_src>
import functools

import jax
import jax.numpy as jnp
from jax.experimental import pallas as pl
from jax.experimental.pallas import tpu as pltpu


# ------------------------------ fused single-pass kernel ------------------------------

def _fused_ca_kernel(x_ref, w1t_ref, b1_ref, w2_ref, b2_ref, o_ref, *, inv_hw):
    # x_ref: (1, C, HW)  w1t_ref: (C, Cr)  b1_ref: (1, Cr)  w2_ref: (C, Cr)  b2_ref: (C, 1)
    hw = x_ref.shape[2]

    # Global average pool.  Chunked VPU adds (128-lane slices) so the XLU only
    # sees one final 128->1 reduce; falls back to a plain sum for awkward HW.
    if hw % 128 == 0 and hw > 128 and (hw // 128) <= 512:
        part = x_ref[0, :, 0:128].astype(jnp.float32)
        for i in range(1, hw // 128):
            part = part + x_ref[0, :, i * 128:(i + 1) * 128].astype(jnp.float32)
        pooled = jnp.sum(part, axis=1, keepdims=True) * inv_hw            # (C, 1) f32
    else:
        pooled = jnp.sum(x_ref[0].astype(jnp.float32), axis=1, keepdims=True) * inv_hw

    # Squeeze-excite MLP on VPU/XLU (tiny; skip the MXU).
    h = jnp.maximum(jnp.sum(w1t_ref[...] * pooled, axis=0, keepdims=True)
                    + b1_ref[...], 0.0)                                    # (1, Cr)
    g = jnp.sum(w2_ref[...] * h, axis=1, keepdims=True) + b2_ref[...]      # (C, 1)
    y = jax.nn.sigmoid(g)                                                  # f32 gate

    # Rescale in the same body (x stays in VMEM -> no second HBM read).
    o_ref[0] = (x_ref[0] * y).astype(o_ref.dtype)


# ------------------------------ two-pass fallback: pool + MLP ------------------------------

def _pool_mlp_kernel(x_ref, w1t_ref, b1_ref, w2_ref, b2_ref, y_ref, acc_ref,
                     *, inv_hw, hw, tile, masked):
    # x_ref block: (1, C, tile); acc_ref: (C, 128) f32 scratch.
    t = pl.program_id(1)

    @pl.when(t == 0)
    def _():
        acc_ref[...] = jnp.zeros_like(acc_ref)

    c = acc_ref.shape[0]
    if tile % 128 == 0 and tile >= 128:
        # VPU accumulation into (C, 128); XLU reduce only once, in the epilogue.
        if masked:
            lane = jax.lax.broadcasted_iota(jnp.int32, (c, 128), 1)
            base = t * tile
        part = jnp.zeros((c, 128), jnp.float32)
        for i in range(tile // 128):
            chunk = x_ref[0, :, i * 128:(i + 1) * 128].astype(jnp.float32)
            if masked:
                chunk = jnp.where(base + (i * 128) + lane < hw, chunk, 0.0)
            part = part + chunk
        acc_ref[...] += part
    else:
        # tile == full HW (< 128): single un-masked block.
        acc_ref[:, 0:1] += jnp.sum(x_ref[0].astype(jnp.float32), axis=1, keepdims=True)

    @pl.when(t == pl.num_programs(1) - 1)
    def _():
        pooled = jnp.sum(acc_ref[...], axis=1, keepdims=True) * inv_hw     # (C, 1) f32
        h = jnp.maximum(jnp.sum(w1t_ref[...] * pooled, axis=0, keepdims=True)
                        + b1_ref[...], 0.0)                                # (1, Cr)
        g = jnp.sum(w2_ref[...] * h, axis=1, keepdims=True) + b2_ref[...]  # (C, 1)
        y_ref[0] = jax.nn.sigmoid(g).astype(y_ref.dtype)                   # f32 gate


# ------------------------------ two-pass fallback: rescale ------------------------------

def _rescale_kernel(x_ref, y_ref, o_ref):
    # x_ref: (1, C, T) native dtype, y_ref: (1, C, 1) f32 -> broadcast over lanes.
    o_ref[...] = (x_ref[...] * y_ref[...]).astype(o_ref.dtype)


# ------------------------------ sizing helpers ------------------------------

def _vmem_capacity_bytes():
    """Physical VMEM for this generation; conservative (v7x) fallback."""
    try:
        return int(pltpu.get_tpu_info().vmem_capacity_bytes)
    except Exception:
        return 64 << 20


def _pick_hw_tile(hw, c, itemsize, budget_bytes):
    """Lane-axis tile for the two-pass path.

    Returns (T, masked).  T is a multiple of 128 keeping one (C, T) buffer
    under budget_bytes, preferring exact divisors of hw.  masked=True means
    the last grid block is ragged and the pool kernel must mask padded lanes.
    """
    if hw < 128:
        return hw, False                         # single full-extent block
    t_max = max(128, ((budget_bytes // max(1, c * itemsize)) // 128) * 128)
    if hw % 128 == 0:
        t = min(t_max, hw)
        while t >= 128:
            if hw % t == 0:
                return t, False
            t -= 128
        return 128, False                        # unreachable (128 divides hw)
    # hw not a multiple of 128: no dividing 128-multiple exists; mask the tail.
    return min(t_max, (hw // 128) * 128), True


# ------------------------------ wrapper ------------------------------

def ca_layer(x_nchw, w1, b1, w2, b2, *, force_two_pass=False, max_tile_bytes=None):
    """x_nchw: (N, C, H, W).  w1: (Cr, C), b1: (Cr,), w2: (C, Cr), b2: (C,)."""
    N, C, H, W = x_nchw.shape
    Cr = w1.shape[0]
    HW = H * W
    dtype = x_nchw.dtype
    itemsize = jnp.dtype(dtype).itemsize

    # Free reshape (no transpose): channels on sublanes, HW on lanes.
    x = x_nchw.reshape(N, C, HW)

    phys_vmem = _vmem_capacity_bytes()
    vmem_limit = int((phys_vmem * 3) // 4)   # ~48 MiB on v7x, ~96 MiB on v5e/v6e

    # Tiny parameters in kernel-friendly layouts, f32 for the MLP math.
    w1t = jnp.transpose(w1).astype(jnp.float32)   # (C, Cr)
    w2f = w2.astype(jnp.float32)                  # (C, Cr), native orientation
    b1r = b1.reshape(1, Cr).astype(jnp.float32)
    b2r = b2.reshape(C, 1).astype(jnp.float32)

    # -------- fused single-pass path --------
    slab = C * HW * itemsize                      # one image's (C, HW) slab
    # input + output blocks are each double-buffered -> ~4x slab, plus margin.
    fused_ok = (not force_two_pass) and (4 * slab + (2 << 20) <= vmem_limit)

    if fused_ok:
        out = pl.pallas_call(
            functools.partial(_fused_ca_kernel, inv_hw=1.0 / HW),
            out_shape=jax.ShapeDtypeStruct((N, C, HW), dtype),
            grid_spec=pltpu.PrefetchScalarGridSpec(
                num_scalar_prefetch=0,
                grid=(N,),
                in_specs=[
                    pl.BlockSpec((1, C, HW), lambda n: (n, 0, 0)),   # x
                    pl.BlockSpec((C, Cr), lambda n: (0, 0)),         # w1^T
                    pl.BlockSpec((1, Cr), lambda n: (0, 0)),         # b1
                    pl.BlockSpec((C, Cr), lambda n: (0, 0)),         # w2
                    pl.BlockSpec((C, 1), lambda n: (0, 0)),          # b2
                ],
                out_specs=pl.BlockSpec((1, C, HW), lambda n: (n, 0, 0)),
            ),
            compiler_params=pltpu.CompilerParams(
                dimension_semantics=("parallel",),
                vmem_limit_bytes=vmem_limit,
            ),
        )(x, w1t, b1r, w2f, b2r)
        return out.reshape(N, C, H, W)

    # -------- two-pass fallback (per-image slab too big for VMEM) --------
    budget = phys_vmem // 8                       # per (C, T) buffer: 16 MiB / 8 MiB
    if max_tile_bytes is not None:
        budget = min(budget, max_tile_bytes)
    T, masked = _pick_hw_tile(HW, C, itemsize, budget)
    n_t = pl.cdiv(HW, T)

    # pass 1: per-image channel-attention gate y: (N, C, 1) float32
    pool_kernel = functools.partial(_pool_mlp_kernel, inv_hw=1.0 / HW,
                                    hw=HW, tile=T, masked=masked)
    y = pl.pallas_call(
        pool_kernel,
        out_shape=jax.ShapeDtypeStruct((N, C, 1), jnp.float32),
        grid_spec=pltpu.PrefetchScalarGridSpec(
            num_scalar_prefetch=0,
            grid=(N, n_t),
            in_specs=[
                pl.BlockSpec((1, C, T), lambda n, t: (n, 0, t)),     # x
                pl.BlockSpec((C, Cr), lambda n, t: (0, 0)),          # w1^T
                pl.BlockSpec((1, Cr), lambda n, t: (0, 0)),          # b1
                pl.BlockSpec((C, Cr), lambda n, t: (0, 0)),          # w2
                pl.BlockSpec((C, 1), lambda n, t: (0, 0)),           # b2
            ],
            out_specs=pl.BlockSpec((1, C, 1), lambda n, t: (n, 0, 0)),
            scratch_shapes=[pltpu.VMEM((C, 128), jnp.float32)],
        ),
        compiler_params=pltpu.CompilerParams(
            dimension_semantics=("parallel", "arbitrary"),
            vmem_limit_bytes=vmem_limit,
        ),
    )(x, w1t, b1r, w2f, b2r)

    # pass 2: out = x * y (lane-dense stores, native input dtype, f32 gate)
    out = pl.pallas_call(
        _rescale_kernel,
        out_shape=jax.ShapeDtypeStruct((N, C, HW), dtype),
        grid_spec=pltpu.PrefetchScalarGridSpec(
            num_scalar_prefetch=0,
            grid=(N, n_t),
            in_specs=[
                pl.BlockSpec((1, C, T), lambda n, t: (n, 0, t)),     # x
                pl.BlockSpec((1, C, 1), lambda n, t: (n, 0, 0)),     # y
            ],
            out_specs=pl.BlockSpec((1, C, T), lambda n, t: (n, 0, t)),
        ),
        compiler_params=pltpu.CompilerParams(
            dimension_semantics=("parallel", "parallel"),
            vmem_limit_bytes=vmem_limit,
        ),
    )(x, y)

    return out.reshape(N, C, H, W)


# ------------------------------ reference & test ------------------------------

def _reference(x_nchw, w1, b1, w2, b2):
    pooled = jnp.mean(x_nchw, axis=(2, 3))                        # (N, C)
    y1 = jnp.maximum(pooled @ w1.T + b1, 0.0)                     # (N, Cr)
    y2 = jax.nn.sigmoid(y1 @ w2.T + b2)                           # (N, C)
    return x_nchw * y2[:, :, None, None]


if __name__ == "__main__":
    # Small deterministic problem: N=2, C=32, H=W=16, reduction_rate=16 -> Cr=2.
    N, C, H, W = 2, 32, 16, 16
    reduction_rate = 16
    Cr = C // reduction_rate

    key = jax.random.PRNGKey(0)
    kx, k1, k2, k3, k4 = jax.random.split(key, 5)

    x = jax.random.normal(kx, (N, C, H, W), dtype=jnp.float32)
    # Conv2d(C, Cr, 1) weight is (Cr, C, 1, 1); we keep the squeezed (Cr, C) form.
    w1 = jax.random.normal(k1, (Cr, C), dtype=jnp.float32) * 0.1
    b1 = jax.random.normal(k2, (Cr,), dtype=jnp.float32) * 0.1
    w2 = jax.random.normal(k3, (C, Cr), dtype=jnp.float32) * 0.1
    b2 = jax.random.normal(k4, (C,), dtype=jnp.float32) * 0.1

    ref = _reference(x, w1, b1, w2, b2)

    # 1) Fused single-pass path (slab fits VMEM -> default for these shapes).
    out = jax.block_until_ready(ca_layer(x, w1, b1, w2, b2))
    assert out.shape == x.shape and out.dtype == x.dtype
    assert jnp.allclose(out, ref, atol=1e-5, rtol=1e-5), "fused path mismatch"

    # 2) Two-pass tiled path (forced; HW=256 divisible by 128, T=128, 2 tiles).
    out2 = jax.block_until_ready(
        ca_layer(x, w1, b1, w2, b2, force_two_pass=True,
                 max_tile_bytes=C * 128 * 4))
    assert jnp.allclose(out2, ref, atol=1e-5, rtol=1e-5), "two-pass path mismatch"

    # 3) Two-pass with ragged/masked tail (HW=144, T=128, masked last block).
    x3 = jax.random.normal(kx, (N, C, 12, 12), dtype=jnp.float32)
    ref3 = _reference(x3, w1, b1, w2, b2)
    out3 = jax.block_until_ready(
        ca_layer(x3, w1, b1, w2, b2, force_two_pass=True,
                 max_tile_bytes=C * 128 * 4))
    assert jnp.allclose(out3, ref3, atol=1e-5, rtol=1e-5), "masked path mismatch"

    print("KERNEL_OK")
</pallas_src>

<mosaic_0001>
module attributes {stable_mosaic.version = 11 : i64} {
  func.func @_fused_ca_kernel(%arg0: i32, %arg1: memref<1x32x256xf32, #tpu.memory_space<vmem>>, %arg2: memref<32x2xf32, #tpu.memory_space<vmem>>, %arg3: memref<1x2xf32, #tpu.memory_space<vmem>>, %arg4: memref<32x2xf32, #tpu.memory_space<vmem>>, %arg5: memref<32x1xf32, #tpu.memory_space<vmem>>, %arg6: memref<1x32x256xf32, #tpu.memory_space<vmem>>) attributes {dimension_semantics = [#tpu.dimension_semantics<parallel>], iteration_bounds = array<i64: 2>, scalar_prefetch = 0 : i64, scratch_operands = 0 : i64, tpu.core_type = #tpu.core_type<tc>, window_params = [{transform_indices = @transform_0, window_bounds = array<i64: 1, 32, 256>}, {pipeline_mode = #tpu.pipeline_mode<synchronous>, transform_indices = @transform_1, window_bounds = array<i64: 32, 2>}, {pipeline_mode = #tpu.pipeline_mode<synchronous>, transform_indices = @transform_2, window_bounds = array<i64: 1, 2>}, {pipeline_mode = #tpu.pipeline_mode<synchronous>, transform_indices = @transform_3, window_bounds = array<i64: 32, 2>}, {pipeline_mode = #tpu.pipeline_mode<synchronous>, transform_indices = @transform_4, window_bounds = array<i64: 32, 1>}, {transform_indices = @transform_5, window_bounds = array<i64: 1, 32, 256>}]} {
    %c0 = arith.constant 0 : index
    %c0_0 = arith.constant 0 : index
    %c0_1 = arith.constant 0 : index
    %0 = vector.load %arg1[%c0, %c0_0, %c0_1] : memref<1x32x256xf32, #tpu.memory_space<vmem>>, vector<1x32x128xf32>
    %1 = vector.shape_cast %0 : vector<1x32x128xf32> to vector<32x128xf32>
    %c0_2 = arith.constant 0 : index
    %c0_3 = arith.constant 0 : index
    %c128 = arith.constant 128 : index
    %2 = vector.load %arg1[%c0_2, %c0_3, %c128] : memref<1x32x256xf32, #tpu.memory_space<vmem>>, vector<1x32x128xf32>
    %3 = vector.shape_cast %2 : vector<1x32x128xf32> to vector<32x128xf32>
    %4 = arith.addf %1, %3 : vector<32x128xf32>
    %cst = arith.constant dense<0.000000e+00> : vector<32xf32>
    %5 = vector.multi_reduction <add>, %4, %cst [1] : vector<32x128xf32> to vector<32xf32>
    %6 = vector.shape_cast %5 : vector<32xf32> to vector<32x1xf32>
    %cst_4 = arith.constant 3.906250e-03 : f32
    %7 = vector.broadcast %cst_4 : f32 to vector<32x1xf32>
    %8 = arith.mulf %6, %7 : vector<32x1xf32>
    %c0_5 = arith.constant 0 : index
    %c0_6 = arith.constant 0 : index
    %9 = vector.load %arg2[%c0_5, %c0_6] : memref<32x2xf32, #tpu.memory_space<vmem>>, vector<32x2xf32>
    %10 = vector.broadcast %8 : vector<32x1xf32> to vector<32x2xf32>
    %11 = arith.mulf %9, %10 : vector<32x2xf32>
    %cst_7 = arith.constant dense<0.000000e+00> : vector<2xf32>
    %12 = vector.multi_reduction <add>, %11, %cst_7 [0] : vector<32x2xf32> to vector<2xf32>
    %13 = vector.shape_cast %12 : vector<2xf32> to vector<1x2xf32>
    %c0_8 = arith.constant 0 : index
    %c0_9 = arith.constant 0 : index
    %14 = vector.load %arg3[%c0_8, %c0_9] : memref<1x2xf32, #tpu.memory_space<vmem>>, vector<1x2xf32>
    %15 = arith.addf %13, %14 : vector<1x2xf32>
    %cst_10 = arith.constant 0.000000e+00 : f32
    %16 = vector.broadcast %cst_10 : f32 to vector<1x2xf32>
    %17 = arith.maximumf %15, %16 : vector<1x2xf32>
    %c0_11 = arith.constant 0 : index
    %c0_12 = arith.constant 0 : index
    %18 = vector.load %arg4[%c0_11, %c0_12] : memref<32x2xf32, #tpu.memory_space<vmem>>, vector<32x2xf32>
    %19 = vector.broadcast %17 : vector<1x2xf32> to vector<32x2xf32>
    %20 = arith.mulf %18, %19 : vector<32x2xf32>
    %cst_13 = arith.constant dense<0.000000e+00> : vector<32xf32>
    %21 = vector.multi_reduction <add>, %20, %cst_13 [1] : vector<32x2xf32> to vector<32xf32>
    %22 = vector.shape_cast %21 : vector<32xf32> to vector<32x1xf32>
    %c0_14 = arith.constant 0 : index
    %c0_15 = arith.constant 0 : index
    %23 = vector.load %arg5[%c0_14, %c0_15] : memref<32x1xf32, #tpu.memory_space<vmem>>, vector<32x1xf32>
    %24 = arith.addf %22, %23 : vector<32x1xf32>
    %25 = arith.negf %24 : vector<32x1xf32>
    %26 = math.exp %25 : vector<32x1xf32>
    %cst_16 = arith.constant 1.000000e+00 : f32
    %27 = vector.broadcast %cst_16 : f32 to vector<32x1xf32>
    %28 = arith.addf %27, %26 : vector<32x1xf32>
    %29 = arith.divf %27, %28 : vector<32x1xf32>
    %c0_17 = arith.constant 0 : index
    %c0_18 = arith.constant 0 : index
    %c0_19 = arith.constant 0 : index
    %30 = vector.load %arg1[%c0_17, %c0_18, %c0_19] : memref<1x32x256xf32, #tpu.memory_space<vmem>>, vector<1x32x256xf32>
    %31 = vector.shape_cast %30 : vector<1x32x256xf32> to vector<32x256xf32>
    %32 = vector.broadcast %29 : vector<32x1xf32> to vector<32x256xf32>
    %33 = arith.mulf %31, %32 : vector<32x256xf32>
    %c0_20 = arith.constant 0 : index
    %c0_21 = arith.constant 0 : index
    %c0_22 = arith.constant 0 : index
    %34 = vector.load %arg6[%c0_20, %c0_21, %c0_22] : memref<1x32x256xf32, #tpu.memory_space<vmem>>, vector<1x32x256xf32>
    %35 = vector.shape_cast %34 : vector<1x32x256xf32> to vector<32x256xf32>
    %36 = vector.shape_cast %33 : vector<32x256xf32> to vector<1x32x256xf32>
    tpu.vector_store %arg6[%c0_20, %c0_21, %c0_22], %36 {strides = array<i32>} : memref<1x32x256xf32, #tpu.memory_space<vmem>>, vector<1x32x256xf32>,
    return
  }
  func.func @transform_0(%arg0: i32) -> (i32, i32, i32) {
    %c0_i32 = arith.constant 0 : i32
    %c0_i32_0 = arith.constant 0 : i32
    %c0_i32_1 = arith.constant 0 : i32
    return %arg0, %c0_i32, %c0_i32_0 : i32, i32, i32
  }
  func.func @transform_1(%arg0: i32) -> (i32, i32) {
    %c0_i32 = arith.constant 0 : i32
    %c0_i32_0 = arith.constant 0 : i32
    %c0_i32_1 = arith.constant 0 : i32
    return %c0_i32, %c0_i32_0 : i32, i32
  }
  func.func @transform_2(%arg0: i32) -> (i32, i32) {
    %c0_i32 = arith.constant 0 : i32
    %c0_i32_0 = arith.constant 0 : i32
    %c0_i32_1 = arith.constant 0 : i32
    return %c0_i32, %c0_i32_0 : i32, i32
  }
  func.func @transform_3(%arg0: i32) -> (i32, i32) {
    %c0_i32 = arith.constant 0 : i32
    %c0_i32_0 = arith.constant 0 : i32
    %c0_i32_1 = arith.constant 0 : i32
    return %c0_i32, %c0_i32_0 : i32, i32
  }
  func.func @transform_4(%arg0: i32) -> (i32, i32) {
    %c0_i32 = arith.constant 0 : i32
    %c0_i32_0 = arith.constant 0 : i32
    %c0_i32_1 = arith.constant 0 : i32
    return %c0_i32, %c0_i32_0 : i32, i32
  }
  func.func @transform_5(%arg0: i32) -> (i32, i32, i32) {
    %c0_i32 = arith.constant 0 : i32
    %c0_i32_0 = arith.constant 0 : i32
    %c0_i32_1 = arith.constant 0 : i32
    return %arg0, %c0_i32, %c0_i32_0 : i32, i32, i32
  }
}

</mosaic_0001>

<bundles_post_ra>
// kernel: tpu_custom_call.1
= control target key start
LH: loop header
LB: loop body
LE: loop exit
PB: predicated region body
PF: predicated region fallthrough
CT: control target
= control target key end

     0   :  { %10 = vsyncpa [#allocation3], 0  ;;  %s944_s0 = inlined_call_operand.hbm [shape: f32[2,32,256], index: 0, kind: input, shape index: {}]   ;;  %s945_s1 = inlined_call_operand.vmem [shape: f32[32,2], index: 1, kind: input, shape index: {}]   ;;  %s946_s2 = inlined_call_operand.vmem [shape: f32[1,2], index: 2, kind: input, shape index: {}]   ;;  %s947_s3 = inlined_call_operand.vmem [shape: f32[32,2], index: 3, kind: input, shape index: {}]   ;;  %s948_s4 = inlined_call_operand.vmem [shape: f32[32,1], index: 4, kind: input, shape index: {}]   ;;  %s949_s5 = inlined_call_operand.hbm [shape: f32[2,32,256], index: 5, kind: output, shape index: {}]  }
   0x1   :  { %12 = vsyncpa [#allocation3 + $0x1], 0 }
   0x2   :  { %13 = vsyncpa [#allocation4], 0 }
   0x3   :  { %15 = vsyncpa [#allocation4 + $0x1], 0  ;;  %s699_s18 = smov 0   ;;  %s701_s19 = smov 0  }
   0x4   :  { %s703_s20 = smov 0   ;;  %s705_s21 = smov 0  }
   0x5 LB: > { %s720_s22 = sadd.s32 4294967295, %s660_s21   ;;  %s475_s23 = sadd.s32 4294967294, %s660_s21   ;;  %s660_s21 = sphi %s705_s21, %s962_s21   ;;  %s656_s20 = sphi %s703_s20, %s961_s20   ;;  %s652_s19 = sphi %s701_s19, %s960_s19   ;;  %s648_s18 = sphi %s699_s18, %s959_s18  }
   0x6   : > { %s724_s24 = sadd.s32 1, %s660_s21   ;;  %s28_s25 = sadd.s32 1, %s656_s20 }
   0x7   : > { %s25_s26 = ssub.s32 %s660_s21, %s724_s24  ;;  %p35_p0 = scmp.ne.s32.totalorder %s656_s20, %s652_s19 }
   0x8   : > { %p26_p1 = scmp.eq.s32.totalorder %s25_s26, 0  ;;  %p36_p2 = scmp.eq.s32.totalorder %s660_s21, 0 }
   0x9   : > { %p41_p3 = scmp.ne.s32.totalorder %s652_s19, %s648_s18  ;;  %p42_p4 = scmp.eq.s32.totalorder %s720_s22, 0 }
   0xa   : > { %s736_s27 = scalar_select %p26_p1, %s656_s20, %s28_s25  }
   0xb   : > { %p738_p5 = por %p36_p2, %p35_p0  ;;  %p742_p6 = por %p42_p4, %p41_p3 }
   0xc   : > { %p149_p7 = scmp.eq.s32.totalorder %s720_s22, 1  ;;  %p155_p8 = scmp.eq.s32.totalorder %s475_s23, 1 }
   0xd   : > { %p507_p10 = scmp.lt.s32.totalorder %s660_s21, 2  ;;  %s187_s7 = sand.u32 1, %s656_s20  }
   0xe   : > { %p749_p11 = por %p149_p7, %p35_p0  ;;  %p753_p12 = por %p155_p8, %p41_p3 }
   0xf   : > { %s493_s8 = sshll.u32 %s660_s21, 10  ;;  %s478_s9 = sshll.u32 %s187_s7, 6 }
  0x10   : > { %s953_s30 = scalar_select %p749_p11, 1, 0 }
  0x11   : > { %s954_s6 = scalar_select %p753_p12, 1, 0 }
  0x12   : > { %s762_s12 = scalar_lea.hbm %s944_s0, %s493_s8  ;;  %s191_s13 = scalar_lea.vmem [#allocation2], %s478_s9 }
  0x13   : > { %s198_s14 = sshll.u32 %s191_s13, 4  ;;  %p766_p13 = pnand %p507_p10, %p738_p5  ;;  %s770_s14 = int_to_ptr.vmem [resolvable:$true] %s198_s14 }
  0x14   : > { %s772_s16 = scalar_lea.sflag [#allocation3], %s187_s7  ;;  %s564_s17 = scalar_lea.hbm %s762_s12, 1024 }
  0x15   : > { %p565_p0 = scmp.ne.s32.totalorder %s762_s12, %s564_s17  ;;  %p566_p1 = pneg %p766_p13 }
  0x16   : > { %s569_s26 = scalar_lea.hbm %s944_s0, 2048  ;;  %p570_p4 = scmp.lt.u32.totalorder %s762_s12, %s944_s0 }
  0x17   : > { %p567_p2 = pnand %p566_p1, %p565_p0  ;;  %p571_p5 = scmp.lt.u32.totalorder %s569_s26, %s564_s17 }
  0x18   : > { %p573_p8 = scmp.lt.u32.totalorder %s564_s17, %s762_s12 }
  0x19   : > { %p568_p3 = pneg %p567_p2  ;;  %p572_p7 = por %p571_p5, %p570_p4 }
  0x1b   : > { %p574_p10 = por %p573_p8, %p572_p7 }
  0x1d   : > { %p575_p9 = pnand %p574_p10, %p568_p3 }
  0x1f   : > { %578 = shalt.err (!%p575_p9)
}
  0x20   : > { %s579_s7 = scalar_lea.vmem %s770_s14, 1024  ;;  %s662_s9 = smov [#allocation2]  }
  0x21   : > { %p580_p0 = scmp.ne.s32.totalorder %s770_s14, %s579_s7  ;;  %s584_s10 = sshll.u32 %s662_s9, 4  ;;  %s585_s10 = int_to_ptr.vmem [resolvable:$false] %s584_s10 }
  0x22   : > { %s586_s11 = scalar_lea.vmem %s585_s10, 2048  ;;  %p587_p11 = scmp.lt.s32.totalorder %s770_s14, %s585_s10 }
  0x23   : > { %p582_p2 = pnand %p580_p0, %p566_p1  ;;  %p588_p4 = scmp.lt.s32.totalorder %s586_s11, %s579_s7 }
  0x25   : > { %p583_p12 = pneg %p582_p2  ;;  %p589_p5 = por %p588_p4, %p587_p11 }
  0x27   : > { %p590_p7 = pnand %p589_p5, %p583_p12 }
  0x29   : > { %593 = shalt.err (!%p590_p7)
}
  0x2a   : > { %s663_s13 = smov 256   ;;  %s664_s17 = smov 16  }
  0x2b   : > { %502 = dma.hbm_to_vmem [thread:$0]  (!%p766_p13), %s762_s12, 1024, %s770_s14, %s772_s16, %s663_s13, %s663_s13, %s664_s17  }
  0x2c   : > { %p481_p9 = scmp.ge.s32.totalorder %s660_s21, 1  ;;  %p206_p1 = scmp.lt.s32.totalorder %s660_s21, 3 }
  0x2e   : > { %p207_p3 = pnand %p481_p9, %p206_p1 }
  0x2f   : > { %s803_s23 = sand.u32 (!%p207_p3), 1, %s652_s19  }
  0x30   : > { %210 = sbr.rel (%p207_p3) target bundleno = 561 (0x231), region = 40  ;;  %s482_s25 = sshll.u32 (!%p207_p3), %s803_s23, 6 }
  0x31   : > { %s213_s26 = scalar_lea.sflag (!%p207_p3), [#allocation3], %s803_s23  ;;  %s216_s28 = scalar_lea.vmem (!%p207_p3), [#allocation2], %s482_s25 }
  0x37   : > { %639 = dma.done.wait (%p742_p6), %s213_s26, 1024  }
  0x38   : > { %641 = vsyncadd (%p742_p6), %s213_s26, 4294966272  ;;  %v813_v0 = vld [vmem:[%s216_s28] sm:$0xff]  ;;  %v815_v1 = vld [vmem:[%s216_s28 + $0x8] sm:$0xff]  ;;  %vm275_vm0 = vcmask 15360   ;;  %v296_v38 = vlaneseq  ;;  %v665_v60 = vmov 0   ;;  %s242_s26 = scalar_lea.vmem [#allocation5], %s482_s25 }
  0x39   : > { %v817_v2 = vld [vmem:[%s216_s28 + $0x20] sm:$0xff]  ;;  %v251_v3 = vadd.f32 %v815_v1, %v813_v0  ;;  %v821_v4 = vld [vmem:[%s216_s28 + $0x28] sm:$0xff]  ;;  %v823_v5 = vld [vmem:[%s216_s28 + $0x10] sm:$0xff]  ;;  %547 = vset.pattern.permute.xlu1 %v665_v60  ;;  %546 = vset.pattern.permute.xlu0 %v665_v60  ;;  %s494_s29 = sshll.u32 %s720_s22, 10  ;;  %s389_s22 = scalar_lea.sflag [#allocation4], %s803_s23 }
  0x3a   : > { %v825_v6 = vld [vmem:[%s216_s28 + $0x18] sm:$0xff]  ;;  %v253_v7 = vadd.f32 %v821_v4, %v817_v2  ;;  %v829_v8 = vld [vmem:[%s216_s28 + $0x30] sm:$0xff]  ;;  %v267_v15 = vld [vmem:[%s945_s1] sm:$0xff]  ;;  %v297_v41 = vshrl.u32 %v296_v38, 7  ;;  %s898_s14 = scalar_lea.hbm %s949_s5, %s494_s29  ;;  %p956_p11 = scmp.ne.s32.totalorder %s953_s30, 0 }
  0x3b   : > { %v831_v9 = vld [vmem:[%s216_s28 + $0x38] sm:$0xff]  ;;  %255 = vadd.xlane.f32.xlu0 %v251_v3  ;;  %v252_v10 = vadd.f32 %v825_v6, %v823_v5  ;;  %v269_v17 = vld [vmem:[%s945_s1 + $0x10] sm:$0xff]  ;;  %v268_v18 = vld [vmem:[%s945_s1 + $0x8] sm:$0xff]  ;;  %s402_s28 = sshll.u32 %s242_s26, 4  ;;  %s666_s16 = smov [#allocation5]   ;;  %s893_s28 = int_to_ptr.vmem [resolvable:$true] %s402_s28 }
  0x3c   : > { %259 = vadd.xlane.f32.xlu1 %v253_v7  ;;  %v254_v11 = vadd.f32 %v831_v9, %v829_v8  ;;  %v270_v22 = vld [vmem:[%s945_s1 + $0x18] sm:$0xff]  ;;  %v289_v42 = vld [vmem:[%s946_s2] sm:$0x1]  ;;  %v298_v45 = vsub.s32 0, %v297_v41  ;;  %v293_v47 = vld [vmem:[%s947_s3 + $0x8] sm:$0xff]  ;;  %s594_s15 = scalar_lea.vmem %s893_s28, 1024 }
  0x3d   : > { %v292_v48 = vld [vmem:[%s947_s3] sm:$0xff]  ;;  %v295_v50 = vld [vmem:[%s947_s3 + $0x18] sm:$0xff]  ;;  %v294_v51 = vld [vmem:[%s947_s3 + $0x10] sm:$0xff]  ;;  %p595_p6 = scmp.ne.s32.totalorder %s893_s28, %s594_s15  ;;  %s598_s8 = sshll.u32 %s666_s16, 4  ;;  %s599_s8 = int_to_ptr.vmem [resolvable:$false] %s598_s8 }
  0x3e   : > { %v317_v61 = vld [vmem:[%s948_s4 + $0x8] sm:$0xff]  ;;  %v316_v62 = vld [vmem:[%s948_s4] sm:$0xff]  ;;  %s600_s7 = scalar_lea.vmem %s599_s8, 2048  ;;  %p601_p8 = scmp.lt.s32.totalorder %s893_s28, %s599_s8 }
  0x3f   : > { %257 = vadd.xlane.f32.xlu0 %v252_v10  ;;  %p596_p12 = pnand %p595_p6, %p956_p11  ;;  %p602_p10 = scmp.lt.s32.totalorder %s600_s7, %s594_s15 }
  0x40   : > { %261 = vadd.xlane.f32.xlu1 %v254_v11  ;;  %v319_v11 = vld [vmem:[%s948_s4 + $0x18] sm:$0xff] }
  0x41   : > { %p597_p13 = pneg %p596_p12  ;;  %p603_p0 = por %p602_p10, %p601_p8 }
  0x43   : > { %p604_p2 = pnand %p603_p0, %p597_p13 }
  0xc8   : > { %v256_v12 = vpop.xlane.xlu0 %255 }
  0xc9   : > { %v263_v13 = vmul.f32 0.00390625, %v256_v12  ;;  %v260_v14 = vpop.xlane.xlu1 %259  ;;  %v318_v12 = vld [vmem:[%s948_s4 + $0x10] sm:$0xff] }
  0xca   : > { %v265_v16 = vmul.f32 0.00390625, %v260_v14 }
  0xcb   : > { %v271_v20 = vmul.f32 %v267_v15, %v263_v13 }
  0xcc   : > { %v258_v19 = vpop.xlane.xlu0 %257  ;;  %v273_v25 = vmul.f32 %v269_v17, %v265_v16 }
  0xcd   : > { %v264_v21 = vmul.f32 0.00390625, %v258_v19  ;;  %v262_v23 = vpop.xlane.xlu1 %261  ;;  %v276_v28 = vsel %vm275_vm0, %v271_v20, 0.0 }
  0xce   : > { %v266_v24 = vmul.f32 0.00390625, %v262_v23  ;;  %v279_v31 = vsel %vm275_vm0, %v273_v25, 0.0 }
  0xcf   : > { %v272_v26 = vmul.f32 %v268_v18, %v264_v21 }
  0xd0   : > { %v274_v27 = vmul.f32 %v270_v22, %v266_v24 }
  0xd1   : > { %v277_v29 = vsel %vm275_vm0, %v272_v26, 0.0 }
  0xd2   : > { %v278_v30 = vadd.f32 %v277_v29, %v276_v28  ;;  %v281_v32 = vsel %vm275_vm0, %v274_v27, 0.0 }
  0xd4   : > { %v280_v33 = vadd.f32 %v279_v31, %v278_v30 }
  0xd6   : > { %v282_v34 = vadd.f32 %v281_v32, %v280_v33 }
  0xd8   : > { %v283_v35 = vrot.slane %v282_v34, 4 }
  0xda   : > { %v284_v36 = vadd.f32 %v283_v35, %v282_v34 }
  0xdc   : > { %v285_v37 = vrot.slane %v284_v36, 2 }
  0xde   : > { %v286_v39 = vadd.f32 %v285_v37, %v284_v36 }
  0xe0   : > { %v287_v40 = vrot.slane %v286_v39, 1 }
  0xe2   : > { %v288_v43 = vadd.f32 %v287_v40, %v286_v39 }
  0xe4   : > { %v290_v44 = vadd.f32 %v289_v42, %v288_v43 }
  0xe6   : > { %v291_v46 = vmax.f32 %v290_v44, 0.0 }
  0xe8   : > { %v299_v49 = vrot.slane %v291_v46, %v298_v45 }
  0xea   : > { %v301_v52 = vmul.f32 %v299_v49, %v293_v47  ;;  %v300_v53 = vmul.f32 %v299_v49, %v292_v48  ;;  %v303_v56 = vmul.f32 %v299_v49, %v295_v50  ;;  %v302_v57 = vmul.f32 %v299_v49, %v294_v51 }
  0xec   : > { %v307_v54 = vsel %vm275_vm0, %v301_v52, 0.0  ;;  %v304_v55 = vsel %vm275_vm0, %v300_v53, 0.0  ;;  %v313_v58 = vsel %vm275_vm0, %v303_v56, 0.0  ;;  %v310_v59 = vsel %vm275_vm0, %v302_v57, 0.0 }
  0xed   : > { %308 = vadd.xlane.f32.xlu1 %v307_v54  ;;  %305 = vadd.xlane.f32.xlu0 %v304_v55 }
  0xf1   : > { %314 = vadd.xlane.f32.xlu1 %v313_v58  ;;  %311 = vadd.xlane.f32.xlu0 %v310_v59 }
 0x17a   : > { %v309_v63 = vpop.xlane.xlu1 %308  ;;  %v306_v3 = vpop.xlane.xlu0 %305 }
 0x17b   : > { %v321_v7 = vadd.f32 %v317_v61, %v309_v63  ;;  %v320_v10 = vadd.f32 %v316_v62, %v306_v3 }
 0x17d   : > { %v485_v13 = vmul.f32 -1.442695, %v321_v7  ;;  %v484_v14 = vmul.f32 -1.442695, %v320_v10 }
 0x17e   : > { %v315_v15 = vpop.xlane.xlu1 %314  ;;  %v312_v16 = vpop.xlane.xlu0 %311 }
 0x17f   : > { %548 = vpow2.f32 %v485_v13  ;;  %v323_v17 = vadd.f32 %v319_v11, %v315_v15  ;;  %v322_v18 = vadd.f32 %v318_v12, %v312_v16 }
 0x180   : > { %550 = vpow2.f32 %v484_v14 }
 0x181   : > { %v487_v19 = vmul.f32 -1.442695, %v323_v17  ;;  %v486_v20 = vmul.f32 -1.442695, %v322_v18 }
 0x183   : > { %552 = vpow2.f32 %v487_v19 }
 0x184   : > { %554 = vpow2.f32 %v486_v20 }
 0x189   : > { %v549_v21 = vpop.eup %548 }
 0x18a   : > { %v551_v22 = vpop.eup %550  ;;  %v337_v23 = vadd.f32 1.0, %v549_v21 }
 0x18b   : > { %v336_v24 = vadd.f32 1.0, %v551_v22 }
 0x18c   : > { %556 = vrcp.f32 %v337_v23 }
 0x18d   : > { %v553_v25 = vpop.eup %552  ;;  %558 = vrcp.f32 %v336_v24 }
 0x18e   : > { %v555_v26 = vpop.eup %554  ;;  %v339_v28 = vadd.f32 1.0, %v553_v25 }
 0x18f   : > { %v338_v27 = vadd.f32 1.0, %v555_v26 }
 0x191   : > { %560 = vrcp.f32 %v338_v27 }
 0x192   : > { %562 = vrcp.f32 %v339_v28 }
 0x196   : > { %v557_v29 = vpop.eup %556 }
 0x197   : > { %v559_v30 = vpop.eup %558  ;;  %359 = vperm.xlu1 %547, %v557_v29  }
 0x198   : > { %354 = vperm.xlu0 %546, %v559_v30  }
 0x19b   : > { %v561_v31 = vpop.eup %560 }
 0x19c   : > { %364 = vperm.xlu1 %547, %v561_v31   ;;  %v563_v32 = vpop.eup %562 }
 0x1a0   : > { %369 = vperm.xlu1 %547, %v563_v32  }
 0x216   : > { %v360_v33 = vpop.permute.xlu1 %359 }
 0x217   : > { %v374_v34 = vmul.f32 %v360_v33, %v823_v5  ;;  %v375_v35 = vmul.f32 %v360_v33, %v825_v6  ;;  %v355_v36 = vpop.permute.xlu0 %354 }
 0x218   : > { %v372_v37 = vmul.f32 %v355_v36, %v813_v0  ;;  %v373_v38 = vmul.f32 %v355_v36, %v815_v1 }
 0x219   : > { %382 = vst [vmem:[%s242_s26 + $0x10] sm:$0xff] %v374_v34  ;;  %383 = vst [vmem:[%s242_s26 + $0x18] sm:$0xff] %v375_v35 }
 0x21a   : > { %380 = vst [vmem:[%s242_s26] sm:$0xff] %v372_v37  ;;  %381 = vst [vmem:[%s242_s26 + $0x8] sm:$0xff] %v373_v38 }
 0x21b   : > { %v365_v39 = vpop.permute.xlu1 %364 }
 0x21c   : > { %v376_v40 = vmul.f32 %v365_v39, %v817_v2  ;;  %v377_v5 = vmul.f32 %v365_v39, %v821_v4 }
 0x21e   : > { %384 = vst [vmem:[%s242_s26 + $0x20] sm:$0xff] %v376_v40  ;;  %385 = vst [vmem:[%s242_s26 + $0x28] sm:$0xff] %v377_v5 }
 0x21f   : > { %v370_v0 = vpop.permute.xlu1 %369 }
 0x220   : > { %v378_v1 = vmul.f32 %v370_v0, %v829_v8  ;;  %v379_v2 = vmul.f32 %v370_v0, %v831_v9 }
 0x222   : > { %386 = vst [vmem:[%s242_s26 + $0x30] sm:$0xff] %v378_v1  ;;  %387 = vst [vmem:[%s242_s26 + $0x38] sm:$0xff] %v379_v2 }
 0x223   : > { %607 = shalt.err (!%p604_p2)
}
 0x224   : > { %s608_s9 = scalar_lea.hbm %s898_s14, 1024  ;;  %s612_s13 = scalar_lea.hbm %s949_s5, 2048 }
 0x225   : > { %p609_p4 = scmp.ne.s32.totalorder %s898_s14, %s608_s9  ;;  %p613_p9 = scmp.lt.u32.totalorder %s898_s14, %s949_s5 }
 0x226   : > { %p614_p1 = scmp.lt.u32.totalorder %s612_s13, %s608_s9  ;;  %p616_p6 = scmp.lt.u32.totalorder %s608_s9, %s898_s14 }
 0x227   : > { %p610_p5 = pnand %p609_p4, %p956_p11 }
 0x228   : > { %p615_p3 = por %p614_p1, %p613_p9 }
 0x229   : > { %p611_p7 = pneg %p610_p5 }
 0x22a   : > { %p617_p12 = por %p616_p6, %p615_p3 }
 0x22c   : > { %p618_p13 = pnand %p617_p12, %p611_p7 }
 0x22e   : > { %621 = shalt.err (!%p618_p13)
}
 0x22f   : > { %s667_s29 = smov 256   ;;  %s668_s25 = smov 16  }
 0x230   : > { %497 = dma.vmem_to_hbm [thread:$0]  (%p956_p11), %s893_s28, 1024, %s898_s14, %s389_s22, %s667_s29, %s667_s29, %s668_s25  }
 0x231 PF: > { %s417_s12 = sand.u32 1, %s648_s18   ;;  %p957_p8 = scmp.ne.s32.totalorder %s954_s6, 0 }
 0x232   : > { %p958_p10 = scmp.ge.s32.totalorder %s660_s21, 2  ;;  %s418_s15 = scalar_lea.sflag [#allocation4], %s417_s12 }
 0x234   : > { %p504_p0 = pnand %p958_p10, %p957_p8 }
 0x236   : > { %643 = dma.done.wait (!%p504_p0), %s418_s15, 1024  }
 0x237   : > { %645 = vsyncadd (!%p504_p0), %s418_s15, 4294966272  ;;  %p18_p2 = scmp.ge.s32.totalorder %s724_s24, 4   ;;  %s959_s18 = smov %s652_s19 }
 0x238   : > { %s960_s19 = smov %s656_s20  ;;  %s961_s20 = smov %s736_s27 }
 0x239   : > { %s962_s21 = smov %s724_s24  ;;  %20 = sbr.rel (!%p18_p2) target bundleno = 5 (0x5), region = 85 }
 0x240   :  { %423 = vsyncpa [#allocation3], 1 }
 0x241   :  { %425 = vsyncpa [#allocation3 + $0x1], 1 }
 0x242   :  { %426 = vsyncpa [#allocation4], 1 }
 0x243   :  { %428 = vsyncpa [#allocation4 + $0x1], 1 }

</bundles_post_ra>
